<compile_context>
chip_gen: v6e
topology: v6e:2x2x1
jax: 0.10.0
libtpu: 0.0.40
codegen_flags: <defaults>
</compile_context>

<pallas_src>
import functools

import jax
import jax.numpy as jnp
from jax import lax
from jax.experimental import pallas as pl
from jax.experimental.pallas import tpu as pltpu


def _round_up(a, b):
    return (a + b - 1) // b * b


# ---------------------------------------------------------------------------
# Phase 1: Conv3d (one big im2col matmul) + MaxPool3d + one-pass BN statistics
# ---------------------------------------------------------------------------
def conv_pool_stats_kernel(cols_ref, w_ref, pooled_ref, stats_ref, *,
                           valid_m, tile_m):
    i = pl.program_id(0)
    P, TM, K = cols_ref.shape
    Cout = w_ref.shape[1]

    # Single (P*TM, K) x (K, Cout) matmul: bf16 operands, f32 accumulation.
    patches = cols_ref[...].reshape(P * TM, K)          # leading-dim merge (free)
    y = jnp.dot(patches, w_ref[...], preferred_element_type=jnp.float32)

    # MaxPool3d over the P = pool_k^3 offsets.
    pooled = jnp.max(y.reshape(P, TM, Cout), axis=0)    # (TM, Cout)

    # Lane-dense layout for stats / stores: (Cout, TM).
    pooled_t = jnp.transpose(pooled)                    # (Cout, TM)
    pooled_ref[...] = pooled_t

    # One-pass BatchNorm statistics (sum, sum of squares), masked against the
    # M padding, accumulated across the "arbitrary" M grid axis in the
    # resident stats block.
    col = lax.broadcasted_iota(jnp.int32, (Cout, TM), 1) + i * tile_m
    valid = (col < valid_m).astype(jnp.float32)
    pv = pooled_t * valid
    s1 = jnp.sum(pv, axis=1, keepdims=True)             # (Cout, 1)
    s2 = jnp.sum(pv * pv, axis=1, keepdims=True)        # (Cout, 1)

    @pl.when(i == 0)
    def _init():
        stats_ref[...] = jnp.zeros_like(stats_ref)

    stats_ref[...] += jnp.concatenate([s1, s2], axis=1)  # (Cout, 2)


# ---------------------------------------------------------------------------
# Phase 2: folded BatchNorm affine + LeakyReLU + Dropout (lane-dense (Cout, M))
# ---------------------------------------------------------------------------
def bn_act_dropout_kernel(seed_ref, pooled_ref, scale_ref, shift_ref, out_ref, *,
                          negative_slope, drop_rate, tile_m):
    y = pooled_ref[...] * scale_ref[...] + shift_ref[...]     # (Cout, TM)
    y = jnp.where(y >= 0.0, y, negative_slope * y)            # LeakyReLU

    if drop_rate > 0.0:
        # TODO(synk): positional hash PRNG; cannot bit-match torch's RNG stream.
        i = pl.program_id(0)
        Cout, TM = y.shape
        r = lax.broadcasted_iota(jnp.int32, (Cout, TM), 0)
        c = lax.broadcasted_iota(jnp.int32, (Cout, TM), 1) + i * tile_m
        h = (r * jnp.int32(19349663) + c * jnp.int32(83492791)
             + seed_ref[0] * jnp.int32(73856093))
        # xorshift-multiply finalizer (int32, wrap-around multiplies).
        h = h ^ ((h >> 16) & 0xFFFF)
        h = h * jnp.int32(73244475)
        h = h ^ ((h >> 16) & 0xFFFF)
        h = h * jnp.int32(73244475)
        h = h ^ ((h >> 16) & 0xFFFF)
        u24 = h & jnp.int32(0x00FFFFFF)
        thresh = jnp.int32(int(round(drop_rate * (1 << 24))))   # integer compare
        keep = u24 >= thresh
        y = jnp.where(keep, y * jnp.float32(1.0 / (1.0 - drop_rate)),
                      jnp.float32(0.0))

    out_ref[...] = y


# ---------------------------------------------------------------------------
# Host-side glue: im2col grouped by pool window (NCDHW -> (P, M, K))
# ---------------------------------------------------------------------------
def _im2col_pooled(x, k_size, k_stride, k_pad, p_k):
    N, Cin, D, H, W = x.shape
    xp = jnp.pad(x, ((0, 0), (0, 0), (k_pad,) * 2, (k_pad,) * 2, (k_pad,) * 2))
    Dc = (D + 2 * k_pad - k_size) // k_stride + 1
    Hc = (H + 2 * k_pad - k_size) // k_stride + 1
    Wc = (W + 2 * k_pad - k_size) // k_stride + 1
    slices = []
    for kd in range(k_size):
        for kh in range(k_size):
            for kw in range(k_size):
                slices.append(xp[:, :,
                                 kd:kd + k_stride * Dc:k_stride,
                                 kh:kh + k_stride * Hc:k_stride,
                                 kw:kw + k_stride * Wc:k_stride])
    patches = jnp.stack(slices, axis=-1)            # (N, Cin, Dc, Hc, Wc, k^3)
    patches = patches.transpose(0, 2, 3, 4, 5, 1)   # (N, Dc, Hc, Wc, k^3, Cin)
    K = k_size ** 3 * Cin
    patches = patches.reshape(N, Dc, Hc, Wc, K)
    # torch MaxPool3d floors: drop the remainder rows/cols/slices.
    Do, Ho, Wo = Dc // p_k, Hc // p_k, Wc // p_k
    patches = patches[:, :Do * p_k, :Ho * p_k, :Wo * p_k, :]
    cols = patches.reshape(N, Do, p_k, Ho, p_k, Wo, p_k, K)
    cols = cols.transpose(2, 4, 6, 0, 1, 3, 5, 7)   # (pk,pk,pk, N,Do,Ho,Wo, K)
    cols = cols.reshape(p_k ** 3, N * Do * Ho * Wo, K)
    return cols, (N, Do, Ho, Wo)


def conv_layer_forward(x, w, gamma, beta, seed, *, kernel, pooling, drop_rate,
                       eps=1e-5, negative_slope=0.01):
    k_size, k_stride, k_pad = kernel
    p_k, p_s, p_pad = pooling
    assert p_s == p_k and p_pad == 0, "pooling restricted to stride==kernel, pad==0"

    cols, (N, Do, Ho, Wo) = _im2col_pooled(x, k_size, k_stride, k_pad, p_k)
    P, M, K = cols.shape
    Cout = w.shape[0]

    # Tile the pooled-position axis M.  Per-step VMEM (double-buffered cols tile
    # + resident weight + pooled/out tiles) stays at a few MiB, comfortably
    # inside the default scoped VMEM on v5e/v6e and v7x's smaller 64 MiB.
    TM = min(1024, _round_up(M, 128))
    Mpad = _round_up(M, TM)
    if Mpad != M:
        cols = jnp.pad(cols, ((0, 0), (0, Mpad - M), (0, 0)))

    # bf16 MXU inputs (f32 accumulation inside the kernel).
    cols_bf16 = cols.astype(jnp.bfloat16)
    # torch Conv3d weight (Cout, Cin, kd, kh, kw) -> (kd*kh*kw*Cin, Cout)
    w_mat = jnp.transpose(w, (2, 3, 4, 1, 0)).reshape(K, Cout).astype(jnp.bfloat16)

    grid = (Mpad // TM,)

    pooled, stats = pl.pallas_call(
        functools.partial(conv_pool_stats_kernel, valid_m=M, tile_m=TM),
        grid=grid,
        in_specs=[
            pl.BlockSpec((P, TM, K), lambda i: (0, i, 0)),     # im2col tile
            pl.BlockSpec((K, Cout), lambda i: (0, 0)),         # weight (resident)
        ],
        out_specs=[
            pl.BlockSpec((Cout, TM), lambda i: (0, i)),        # pooled (lane-dense)
            pl.BlockSpec((Cout, 2), lambda i: (0, 0)),         # sum / sumsq (resident)
        ],
        out_shape=[
            jax.ShapeDtypeStruct((Cout, Mpad), jnp.float32),
            jax.ShapeDtypeStruct((Cout, 2), jnp.float32),
        ],
        compiler_params=pltpu.CompilerParams(
            dimension_semantics=("arbitrary",),   # stats accumulate across M tiles
            vmem_limit_bytes=32 * 1024 * 1024),
    )(cols_bf16, w_mat)

    # Fold BatchNorm3d (training-mode batch stats, biased variance) into a
    # per-channel scale/shift: 8 floats of XLA work between the two kernels.
    # NOTE: one-pass var = E[x^2] - mean^2 is clamped at 0 for numerical safety.
    # TODO(synk): running_mean / running_var are not updated (training-mode only).
    count = jnp.float32(M)
    mean = stats[:, 0] / count
    var = jnp.maximum(stats[:, 1] / count - mean * mean, 0.0)
    scale = gamma.astype(jnp.float32) * lax.rsqrt(var + eps)
    shift = beta.astype(jnp.float32) - mean * scale

    out_flat = pl.pallas_call(
        functools.partial(bn_act_dropout_kernel, negative_slope=negative_slope,
                          drop_rate=drop_rate, tile_m=TM),
        grid=grid,
        in_specs=[
            pl.BlockSpec(memory_space=pltpu.MemorySpace.SMEM),  # seed (1,) int32
            pl.BlockSpec((Cout, TM), lambda i: (0, i)),         # pooled tile
            pl.BlockSpec((Cout, 1), lambda i: (0, 0)),          # scale (resident)
            pl.BlockSpec((Cout, 1), lambda i: (0, 0)),          # shift (resident)
        ],
        out_specs=pl.BlockSpec((Cout, TM), lambda i: (0, i)),
        out_shape=jax.ShapeDtypeStruct((Cout, Mpad), jnp.float32),
        compiler_params=pltpu.CompilerParams(
            dimension_semantics=("parallel",),
            vmem_limit_bytes=32 * 1024 * 1024),
    )(seed, pooled, scale.reshape(Cout, 1), shift.reshape(Cout, 1))

    # (Cout, Mpad) -> (Cout, N, Do, Ho, Wo) -> NCDHW
    out = out_flat[:, :M].reshape(Cout, N, Do, Ho, Wo)
    return jnp.transpose(out, (1, 0, 2, 3, 4))


if __name__ == "__main__":
    key = jax.random.PRNGKey(0)
    kx, kw = jax.random.split(key)

    # Small shapes consistent with the module: N=2, Cin=1, Cout=4, spatial 8^3,
    # kernel=(3,1,1) (size 3, stride 1, pad 1), pooling=(2,2,0), drop_rate=0.1.
    x = jax.random.normal(kx, (2, 1, 8, 8, 8), dtype=jnp.float32)
    w = jax.random.normal(kw, (4, 1, 3, 3, 3), dtype=jnp.float32) * 0.1
    gamma = jnp.ones((4,), dtype=jnp.float32)    # BatchNorm3d weight init
    beta = jnp.zeros((4,), dtype=jnp.float32)    # BatchNorm3d bias init
    seed = jnp.array([0], dtype=jnp.int32)

    out = conv_layer_forward(x, w, gamma, beta, seed,
                             kernel=(3, 1, 1), pooling=(2, 2, 0), drop_rate=0.1)
    jax.block_until_ready(out)
    assert out.shape == (2, 4, 4, 4, 4), out.shape
    assert bool(jnp.all(jnp.isfinite(out)))
    print("KERNEL_OK")
</pallas_src>

<mosaic_0001>
module attributes {stable_mosaic.version = 11 : i64} {
  func.func @conv_pool_stats_kernel(%arg0: i32, %arg1: memref<8x128x27xbf16, #tpu.memory_space<vmem>>, %arg2: memref<27x4xbf16, #tpu.memory_space<vmem>>, %arg3: memref<4x128xf32, #tpu.memory_space<vmem>>, %arg4: memref<4x2xf32, #tpu.memory_space<vmem>>) attributes {dimension_semantics = [#tpu.dimension_semantics<arbitrary>], iteration_bounds = array<i64: 1>, scalar_prefetch = 0 : i64, scratch_operands = 0 : i64, tpu.core_type = #tpu.core_type<tc>, window_params = [{transform_indices = @transform_0, window_bounds = array<i64: 8, 128, 27>}, {pipeline_mode = #tpu.pipeline_mode<synchronous>, transform_indices = @transform_1, window_bounds = array<i64: 27, 4>}, {transform_indices = @transform_2, window_bounds = array<i64: 4, 128>}, {pipeline_mode = #tpu.pipeline_mode<synchronous>, transform_indices = @transform_3, window_bounds = array<i64: 4, 2>}]} {
    %c0 = arith.constant 0 : index
    %c0_0 = arith.constant 0 : index
    %c0_1 = arith.constant 0 : index
    %0 = vector.load %arg1[%c0, %c0_0, %c0_1] : memref<8x128x27xbf16, #tpu.memory_space<vmem>>, vector<8x128x27xbf16>
    %1 = vector.shape_cast %0 : vector<8x128x27xbf16> to vector<1024x27xbf16>
    %c0_2 = arith.constant 0 : index
    %c0_3 = arith.constant 0 : index
    %2 = vector.load %arg2[%c0_2, %c0_3] : memref<27x4xbf16, #tpu.memory_space<vmem>>, vector<27x4xbf16>
    %cst = arith.constant dense<0.000000e+00> : vector<1024x4xf32>
    %3 = tpu.matmul %1, %2, %cst {dimension_numbers = #tpu.dot_dimension_numbers<[1], [0], [0], [1], [0, 0, 1, 1], [], []>} : vector<1024x27xbf16>, vector<27x4xbf16>, vector<1024x4xf32> -> vector<1024x4xf32>
    %4 = vector.shape_cast %3 : vector<1024x4xf32> to vector<8x128x4xf32>
    %cst_4 = arith.constant dense<0xFF800000> : vector<128x4xf32>
    %5 = vector.multi_reduction <maximumf>, %4, %cst_4 [0] : vector<8x128x4xf32> to vector<128x4xf32>
    %6 = tpu.transpose %5, [1, 0] : vector<128x4xf32> -> vector<4x128xf32>
    %c0_5 = arith.constant 0 : index
    %c0_6 = arith.constant 0 : index
    %7 = vector.load %arg3[%c0_5, %c0_6] : memref<4x128xf32, #tpu.memory_space<vmem>>, vector<4x128xf32>
    tpu.vector_store %arg3[%c0_5, %c0_6], %6 {strides = array<i32>} : memref<4x128xf32, #tpu.memory_space<vmem>>, vector<4x128xf32>,
    %8 = tpu.iota {dimensions = array<i32: 1>} : vector<4x128xi32>
    %c128_i32 = arith.constant 128 : i32
    %9 = arith.muli %arg0, %c128_i32 : i32
    %10 = vector.broadcast %9 : i32 to vector<4x128xi32>
    %11 = arith.addi %8, %10 : vector<4x128xi32>
    %c128_i32_7 = arith.constant 128 : i32
    %12 = vector.broadcast %c128_i32_7 : i32 to vector<4x128xi32>
    %13 = arith.cmpi slt, %11, %12 : vector<4x128xi32>
    %14 = arith.extui %13 : vector<4x128xi1> to vector<4x128xi32>
    %15 = arith.sitofp %14 : vector<4x128xi32> to vector<4x128xf32>
    %16 = arith.mulf %6, %15 : vector<4x128xf32>
    %cst_8 = arith.constant dense<0.000000e+00> : vector<4xf32>
    %17 = vector.multi_reduction <add>, %16, %cst_8 [1] : vector<4x128xf32> to vector<4xf32>
    %18 = vector.shape_cast %17 : vector<4xf32> to vector<4x1xf32>
    %19 = arith.mulf %16, %16 : vector<4x128xf32>
    %cst_9 = arith.constant dense<0.000000e+00> : vector<4xf32>
    %20 = vector.multi_reduction <add>, %19, %cst_9 [1] : vector<4x128xf32> to vector<4xf32>
    %21 = vector.shape_cast %20 : vector<4xf32> to vector<4x1xf32>
    %c0_i32 = arith.constant 0 : i32
    %22 = arith.cmpi eq, %arg0, %c0_i32 : i32
    %23 = arith.extui %22 : i1 to i32
    %c0_i32_10 = arith.constant 0 : i32
    %24 = arith.cmpi ne, %23, %c0_i32_10 : i32
    scf.if %24 {
      %cst_15 = arith.constant 0.000000e+00 : f32
      %29 = vector.broadcast %cst_15 : f32 to vector<4x2xf32>
      %c0_16 = arith.constant 0 : index
      %c0_17 = arith.constant 0 : index
      %30 = vector.load %arg4[%c0_16, %c0_17] : memref<4x2xf32, #tpu.memory_space<vmem>>, vector<4x2xf32>
      tpu.vector_store %arg4[%c0_16, %c0_17], %29 {strides = array<i32>} : memref<4x2xf32, #tpu.memory_space<vmem>>, vector<4x2xf32>,
    } else {
    }
    %c0_11 = arith.constant 0 : index
    %c0_12 = arith.constant 0 : index
    %25 = vector.load %arg4[%c0_11, %c0_12] : memref<4x2xf32, #tpu.memory_space<vmem>>, vector<4x2xf32>
    %26 = tpu.concatenate %18, %21 in 1 : vector<4x1xf32>, vector<4x1xf32> -> vector<4x2xf32>
    %27 = arith.addf %25, %26 : vector<4x2xf32>
    %c0_13 = arith.constant 0 : index
    %c0_14 = arith.constant 0 : index
    %28 = vector.load %arg4[%c0_13, %c0_14] : memref<4x2xf32, #tpu.memory_space<vmem>>, vector<4x2xf32>
    tpu.vector_store %arg4[%c0_13, %c0_14], %27 {strides = array<i32>} : memref<4x2xf32, #tpu.memory_space<vmem>>, vector<4x2xf32>,
    return
  }
  func.func @transform_0(%arg0: i32) -> (i32, i32, i32) {
    %c0_i32 = arith.constant 0 : i32
    %c0_i32_0 = arith.constant 0 : i32
    %c0_i32_1 = arith.constant 0 : i32
    return %c0_i32, %arg0, %c0_i32_0 : i32, i32, i32
  }
  func.func @transform_1(%arg0: i32) -> (i32, i32) {
    %c0_i32 = arith.constant 0 : i32
    %c0_i32_0 = arith.constant 0 : i32
    %c0_i32_1 = arith.constant 0 : i32
    return %c0_i32, %c0_i32_0 : i32, i32
  }
  func.func @transform_2(%arg0: i32) -> (i32, i32) {
    %c0_i32 = arith.constant 0 : i32
    %c0_i32_0 = arith.constant 0 : i32
    return %c0_i32, %arg0 : i32, i32
  }
  func.func @transform_3(%arg0: i32) -> (i32, i32) {
    %c0_i32 = arith.constant 0 : i32
    %c0_i32_0 = arith.constant 0 : i32
    %c0_i32_1 = arith.constant 0 : i32
    return %c0_i32, %c0_i32_0 : i32, i32
  }
}

</mosaic_0001>

<bundles_post_ra>
// kernel: tpu_custom_call.1
= control target key start
LH: loop header
LB: loop body
LE: loop exit
PB: predicated region body
PF: predicated region fallthrough
CT: control target
= control target key end

     0   :  { %vm671_vm0 = vcmask 1044480   ;;  %vm672_vm1 = vcmask 1045504   ;;  %v1967_v1 = vmov 65535   ;;  %vm478_vm2 = vcmask 220160   ;;  %s2811_s0 = inlined_call_operand.vmem [shape: bf16[8,128,27], index: 0, kind: input, shape index: {}]   ;;  %s2812_s1 = inlined_call_operand.vmem [shape: bf16[27,4], index: 1, kind: input, shape index: {}]   ;;  %s2813_s2 = inlined_call_operand.hbm [shape: f32[4,128], index: 2, kind: output, shape index: {0}]   ;;  %s2814_s3 = inlined_call_operand.vmem [shape: f32[4,2], index: 3, kind: output, shape index: {1}]  }
   0x1   :  { %v1879_v0 = vld [vmem:[%s2812_s1 + $0x8] sm:$0x3f]   ;;  %v673_v2 = vsel %vm671_vm0, 4294967295, %v1967_v1  ;;  %v1881_v3 = vld [vmem:[%s2811_s0] sm:$0xff]   ;;  %v1885_v10 = vld [vmem:[%s2811_s0 + $0x10] sm:$0xff]  }
   0x2   :  { %v674_v4 = vsel %vm672_vm1, %v673_v2, 0  ;;  %v1880_v6 = vld [vmem:[%s2812_s1] sm:$0xff]   ;;  %1744 = vmatprep.mubr.msk.bf16.mxu0 %vm478_vm2, %v1881_v3  ;;  %v1882_v8 = vld [vmem:[%s2811_s0 + $0x8] sm:$0xff]   ;;  %v1887_v11 = vld [vmem:[%s2811_s0 + $0x110] sm:$0xff]  }
   0x3   :  { %v676_v5 = vand.u32 %v1879_v0, %v674_v4  ;;  %v1883_v7 = vld [vmem:[%s2811_s0 + $0x100] sm:$0xff]   ;;  %v1884_v9 = vld [vmem:[%s2811_s0 + $0x108] sm:$0xff]   ;;  %v1886_v12 = vld [vmem:[%s2811_s0 + $0x18] sm:$0xff]  }
   0x4   :  { %1808 = vmatprep.mubr.msk.bf16.mxu1 %vm478_vm2, %v1883_v7  ;;  %v1888_v13 = vld [vmem:[%s2811_s0 + $0x118] sm:$0xff]   ;;  %v1889_v14 = vld [vmem:[%s2811_s0 + $0x20] sm:$0xff]   ;;  %v1890_v16 = vld [vmem:[%s2811_s0 + $0x28] sm:$0xff]  }
   0x5   :  { %1740 = vmatprep.subr.bf16.mxu0 %v676_v5  ;;  %1872 = vmatprep.subr.bf16.mxu1 %v676_v5  ;;  %v1891_v15 = vld [vmem:[%s2811_s0 + $0x120] sm:$0xff]   ;;  %v1892_v17 = vld [vmem:[%s2811_s0 + $0x128] sm:$0xff]   ;;  %v1893_v18 = vld [vmem:[%s2811_s0 + $0x30] sm:$0xff]  }
   0x6   :  { %1741 = vmatpush3.bf16.msra.mxu0 %v676_v5  ;;  %1874 = vmatpush3.bf16.msra.mxu1 %v676_v5  ;;  %v1895_v19 = vld [vmem:[%s2811_s0 + $0x130] sm:$0xff]   ;;  %v1894_v20 = vld [vmem:[%s2811_s0 + $0x38] sm:$0xff]   ;;  %v1897_v22 = vld [vmem:[%s2811_s0 + $0x40] sm:$0xff]  }
   0x7   :  { %1742 = vmatprep.subr.bf16.mxu0 %v1880_v6  ;;  %1873 = vmatprep.subr.bf16.mxu1 %v1880_v6  ;;  %v1896_v21 = vld [vmem:[%s2811_s0 + $0x138] sm:$0xff]   ;;  %v1899_v23 = vld [vmem:[%s2811_s0 + $0x140] sm:$0xff]   ;;  %v1898_v24 = vld [vmem:[%s2811_s0 + $0x48] sm:$0xff]  }
   0x8   :  { %v1900_v25 = vld [vmem:[%s2811_s0 + $0x148] sm:$0xff]   ;;  %v1901_v26 = vld [vmem:[%s2811_s0 + $0x50] sm:$0xff]   ;;  %v1902_v28 = vld [vmem:[%s2811_s0 + $0x58] sm:$0xff]  }
   0x9   :  { %v1903_v27 = vld [vmem:[%s2811_s0 + $0x150] sm:$0xff]   ;;  %v1904_v29 = vld [vmem:[%s2811_s0 + $0x158] sm:$0xff]   ;;  %v1905_v30 = vld [vmem:[%s2811_s0 + $0x60] sm:$0xff]  }
   0xa   :  { %1743 = vmatpush3.bf16.msra.mxu0 %v1880_v6  ;;  %1875 = vmatpush3.bf16.msra.mxu1 %v1880_v6  ;;  %v1907_v31 = vld [vmem:[%s2811_s0 + $0x160] sm:$0xff]   ;;  %v1906_v32 = vld [vmem:[%s2811_s0 + $0x68] sm:$0xff]   ;;  %v1909_v34 = vld [vmem:[%s2811_s0 + $0x70] sm:$0xff]  }
   0xb   :  { %v1908_v33 = vld [vmem:[%s2811_s0 + $0x168] sm:$0xff]   ;;  %v1911_v35 = vld [vmem:[%s2811_s0 + $0x170] sm:$0xff]   ;;  %v1910_v36 = vld [vmem:[%s2811_s0 + $0x78] sm:$0xff]  }
   0xc   :  { %v1912_v37 = vld [vmem:[%s2811_s0 + $0x178] sm:$0xff]  }
   0xd   :  { %1745 = vmatmul.mubr.msk.bf16.vlgmr.msra.gmra.mxu0 %vm478_vm2, %v1882_v8  ;;  %1809 = vmatmul.mubr.msk.bf16.vlgmr.msra.gmra.mxu1 %vm478_vm2, %v1884_v9 }
   0xe   :  { %1748 = vmatprep.mubr.msk.bf16.mxu0 %vm478_vm2, %v1885_v10  ;;  %1812 = vmatprep.mubr.msk.bf16.mxu1 %vm478_vm2, %v1887_v11 }
  0x15   :  { %1749 = vmatmul.mubr.msk.bf16.gmra.mxu0 %vm478_vm2, %v1886_v12  ;;  %1813 = vmatmul.mubr.msk.bf16.gmra.mxu1 %vm478_vm2, %v1888_v13 }
  0x16   :  { %1752 = vmatprep.mubr.msk.bf16.mxu0 %vm478_vm2, %v1889_v14  ;;  %1816 = vmatprep.mubr.msk.bf16.mxu1 %vm478_vm2, %v1891_v15 }
  0x1d   :  { %1753 = vmatmul.mubr.msk.bf16.gmra.mxu0 %vm478_vm2, %v1890_v16  ;;  %1817 = vmatmul.mubr.msk.bf16.gmra.mxu1 %vm478_vm2, %v1892_v17 }
  0x1e   :  { %1756 = vmatprep.mubr.msk.bf16.mxu0 %vm478_vm2, %v1893_v18  ;;  %1820 = vmatprep.mubr.msk.bf16.mxu1 %vm478_vm2, %v1895_v19 }
  0x25   :  { %1757 = vmatmul.mubr.msk.bf16.gmra.mxu0 %vm478_vm2, %v1894_v20  ;;  %1821 = vmatmul.mubr.msk.bf16.gmra.mxu1 %vm478_vm2, %v1896_v21 }
  0x26   :  { %1760 = vmatprep.mubr.msk.bf16.mxu0 %vm478_vm2, %v1897_v22  ;;  %1824 = vmatprep.mubr.msk.bf16.mxu1 %vm478_vm2, %v1899_v23 }
  0x2d   :  { %1761 = vmatmul.mubr.msk.bf16.gmra.mxu0 %vm478_vm2, %v1898_v24  ;;  %1825 = vmatmul.mubr.msk.bf16.gmra.mxu1 %vm478_vm2, %v1900_v25 }
  0x2e   :  { %1764 = vmatprep.mubr.msk.bf16.mxu0 %vm478_vm2, %v1901_v26  ;;  %1828 = vmatprep.mubr.msk.bf16.mxu1 %vm478_vm2, %v1903_v27 }
  0x35   :  { %1765 = vmatmul.mubr.msk.bf16.gmra.mxu0 %vm478_vm2, %v1902_v28  ;;  %1829 = vmatmul.mubr.msk.bf16.gmra.mxu1 %vm478_vm2, %v1904_v29 }
  0x36   :  { %1768 = vmatprep.mubr.msk.bf16.mxu0 %vm478_vm2, %v1905_v30  ;;  %1832 = vmatprep.mubr.msk.bf16.mxu1 %vm478_vm2, %v1907_v31 }
  0x3d   :  { %1769 = vmatmul.mubr.msk.bf16.gmra.mxu0 %vm478_vm2, %v1906_v32  ;;  %1833 = vmatmul.mubr.msk.bf16.gmra.mxu1 %vm478_vm2, %v1908_v33 }
  0x3e   :  { %1772 = vmatprep.mubr.msk.bf16.mxu0 %vm478_vm2, %v1909_v34  ;;  %1836 = vmatprep.mubr.msk.bf16.mxu1 %vm478_vm2, %v1911_v35 }
  0x3f   :  { %9 = vsyncpa [#allocation3], 0  ;;  %v1913_v38 = vld [vmem:[%s2811_s0 + $0x80] sm:$0xff]   ;;  %v1914_v40 = vld [vmem:[%s2811_s0 + $0x88] sm:$0xff]   ;;  %vm1223_vm3 = vcmask 31744   ;;  %vm1506_vm4 = vcmask 1043456  }
  0x40   :  { %v1915_v39 = vld [vmem:[%s2811_s0 + $0x180] sm:$0xff]   ;;  %v1916_v41 = vld [vmem:[%s2811_s0 + $0x188] sm:$0xff]   ;;  %v1917_v42 = vld [vmem:[%s2811_s0 + $0x90] sm:$0xff]   ;;  %vm1518_vm5 = vcmask 11264   ;;  %s1969_s5 = smov [#allocation2]  }
  0x41   :  { %v1919_v43 = vld [vmem:[%s2811_s0 + $0x190] sm:$0xff]   ;;  %v1918_v44 = vld [vmem:[%s2811_s0 + $0x98] sm:$0xff]   ;;  %v1921_v46 = vld [vmem:[%s2811_s0 + $0xa0] sm:$0xff]   ;;  %s1532_s6 = sshll.u32 %s1969_s5, 4  ;;  %s1533_s6 = int_to_ptr.vmem [resolvable:$true] %s1532_s6 }
  0x42   :  { %v1920_v45 = vld [vmem:[%s2811_s0 + $0x198] sm:$0xff]   ;;  %v1923_v47 = vld [vmem:[%s2811_s0 + $0x1a0] sm:$0xff]   ;;  %v1922_v48 = vld [vmem:[%s2811_s0 + $0xa8] sm:$0xff]   ;;  %s1945_s7 = scalar_lea.vmem %s1533_s6, 64  ;;  %p1950_p1 = scmp.lt.s32.totalorder %s1533_s6, %s1533_s6 }
  0x43   :  { %v1924_v49 = vld [vmem:[%s2811_s0 + $0x1a8] sm:$0xff]   ;;  %v1925_v50 = vld [vmem:[%s2811_s0 + $0xb0] sm:$0xff]   ;;  %v1926_v52 = vld [vmem:[%s2811_s0 + $0xb8] sm:$0xff]   ;;  %p1946_p0 = scmp.ne.s32.totalorder %s1533_s6, %s1945_s7  ;;  %p1951_p2 = scmp.lt.s32.totalorder %s1945_s7, %s1945_s7 }
  0x44   :  { %v1927_v51 = vld [vmem:[%s2811_s0 + $0x1b0] sm:$0xff]   ;;  %v1928_v53 = vld [vmem:[%s2811_s0 + $0x1b8] sm:$0xff]   ;;  %v1929_v54 = vld [vmem:[%s2811_s0 + $0xc0] sm:$0xff]  }
  0x45   :  { %1773 = vmatmul.mubr.msk.bf16.gmra.mxu0 %vm478_vm2, %v1910_v36  ;;  %1837 = vmatmul.mubr.msk.bf16.gmra.mxu1 %vm478_vm2, %v1912_v37  ;;  %v1931_v55 = vld [vmem:[%s2811_s0 + $0x1c0] sm:$0xff]   ;;  %v1930_v56 = vld [vmem:[%s2811_s0 + $0xc8] sm:$0xff]   ;;  %v1933_v58 = vld [vmem:[%s2811_s0 + $0xd0] sm:$0xff]   ;;  %p1952_p3 = por %p1951_p2, %p1950_p1 }
  0x46   :  { %1776 = vmatprep.mubr.msk.bf16.mxu0 %vm478_vm2, %v1913_v38  ;;  %1840 = vmatprep.mubr.msk.bf16.mxu1 %vm478_vm2, %v1915_v39  ;;  %v1932_v57 = vld [vmem:[%s2811_s0 + $0x1c8] sm:$0xff]   ;;  %v1936_v59 = vld [vmem:[%s2811_s0 + $0x1d0] sm:$0xff]   ;;  %v1934_v60 = vld [vmem:[%s2811_s0 + $0xd8] sm:$0xff]  }
  0x47   :  { %v1938_v61 = vld [vmem:[%s2811_s0 + $0x1d8] sm:$0xff]   ;;  %v1935_v62 = vld [vmem:[%s2811_s0 + $0xe0] sm:$0xff]   ;;  %v1937_v0 = vld [vmem:[%s2811_s0 + $0xe8] sm:$0xff]   ;;  %p1953_p4 = pnand %p1952_p3, %p1946_p0 }
  0x48   :  { %v1940_v63 = vld [vmem:[%s2811_s0 + $0x1e0] sm:$0xff]   ;;  %v1942_v1 = vld [vmem:[%s2811_s0 + $0x1e8] sm:$0xff]   ;;  %v1939_v2 = vld [vmem:[%s2811_s0 + $0xf0] sm:$0xff]  }
  0x49   :  { %v1943_v3 = vld [vmem:[%s2811_s0 + $0x1f0] sm:$0xff]   ;;  %v1941_v4 = vld [vmem:[%s2811_s0 + $0xf8] sm:$0xff]  }
  0x4a   :  { %v1944_v5 = vld [vmem:[%s2811_s0 + $0x1f8] sm:$0xff]  }
  0x4d   :  { %1777 = vmatmul.mubr.msk.bf16.gmra.mxu0 %vm478_vm2, %v1914_v40  ;;  %1841 = vmatmul.mubr.msk.bf16.gmra.mxu1 %vm478_vm2, %v1916_v41 }
  0x4e   :  { %1780 = vmatprep.mubr.msk.bf16.mxu0 %vm478_vm2, %v1917_v42  ;;  %1844 = vmatprep.mubr.msk.bf16.mxu1 %vm478_vm2, %v1919_v43 }
  0x55   :  { %1781 = vmatmul.mubr.msk.bf16.gmra.mxu0 %vm478_vm2, %v1918_v44  ;;  %1845 = vmatmul.mubr.msk.bf16.gmra.mxu1 %vm478_vm2, %v1920_v45 }
  0x56   :  { %1784 = vmatprep.mubr.msk.bf16.mxu0 %vm478_vm2, %v1921_v46  ;;  %1848 = vmatprep.mubr.msk.bf16.mxu1 %vm478_vm2, %v1923_v47 }
  0x5d   :  { %1785 = vmatmul.mubr.msk.bf16.gmra.mxu0 %vm478_vm2, %v1922_v48  ;;  %1849 = vmatmul.mubr.msk.bf16.gmra.mxu1 %vm478_vm2, %v1924_v49 }
  0x5e   :  { %1788 = vmatprep.mubr.msk.bf16.mxu0 %vm478_vm2, %v1925_v50  ;;  %1852 = vmatprep.mubr.msk.bf16.mxu1 %vm478_vm2, %v1927_v51 }
  0x65   :  { %1789 = vmatmul.mubr.msk.bf16.gmra.mxu0 %vm478_vm2, %v1926_v52  ;;  %1853 = vmatmul.mubr.msk.bf16.gmra.mxu1 %vm478_vm2, %v1928_v53 }
  0x66   :  { %1792 = vmatprep.mubr.msk.bf16.mxu0 %vm478_vm2, %v1929_v54  ;;  %1856 = vmatprep.mubr.msk.bf16.mxu1 %vm478_vm2, %v1931_v55 }
  0x6d   :  { %1793 = vmatmul.mubr.msk.bf16.gmra.mxu0 %vm478_vm2, %v1930_v56  ;;  %1857 = vmatmul.mubr.msk.bf16.gmra.mxu1 %vm478_vm2, %v1932_v57 }
  0x6e   :  { %1796 = vmatprep.mubr.msk.bf16.mxu0 %vm478_vm2, %v1933_v58  ;;  %1860 = vmatprep.mubr.msk.bf16.mxu1 %vm478_vm2, %v1936_v59 }
  0x75   :  { %1797 = vmatmul.mubr.msk.bf16.gmra.mxu0 %vm478_vm2, %v1934_v60  ;;  %1861 = vmatmul.mubr.msk.bf16.gmra.mxu1 %vm478_vm2, %v1938_v61 }
  0x76   :  { %1800 = vmatprep.mubr.msk.bf16.mxu0 %vm478_vm2, %v1935_v62  ;;  %1864 = vmatprep.mubr.msk.bf16.mxu1 %vm478_vm2, %v1940_v63 }
  0x7d   :  { %1801 = vmatmul.mubr.msk.bf16.gmra.mxu0 %vm478_vm2, %v1937_v0  ;;  %1865 = vmatmul.mubr.msk.bf16.gmra.mxu1 %vm478_vm2, %v1942_v1 }
  0x7e   :  { %1804 = vmatprep.mubr.msk.bf16.mxu0 %vm478_vm2, %v1939_v2  ;;  %1868 = vmatprep.mubr.msk.bf16.mxu1 %vm478_vm2, %v1943_v3 }
  0x85   :  { %1805 = vmatmul.mubr.msk.bf16.gmra.mxu0 %vm478_vm2, %v1941_v4  ;;  %1869 = vmatmul.mubr.msk.bf16.gmra.mxu1 %vm478_vm2, %v1944_v5 }
  0xcd   :  { %v1746_v6 = vpop.f32.mrf.mxu0  ;;  %v2252_v7 = vpop.f32.mrf.mxu1 }
  0xce   :  { %v2299_v40 = vsel %vm1223_vm3, %v1746_v6, -inf }
  0xcf   :  { %v2254_v8 = vpop.f32.mrf.mxu0  ;;  %v2256_v9 = vpop.f32.mrf.mxu1 }
  0xd1   :  { %v1747_v10 = vpop.f32.mrf.mxu0  ;;  %v2258_v11 = vpop.f32.mrf.mxu1 }
  0xd2   :  { %v2313_v47 = vsel %vm1223_vm3, %v1747_v10, -inf }
  0xd3   :  { %v2260_v12 = vpop.f32.mrf.mxu0  ;;  %v2262_v13 = vpop.f32.mrf.mxu1 }
  0xd5   :  { %v1750_v14 = vpop.f32.mrf.mxu0  ;;  %v2264_v15 = vpop.f32.mrf.mxu1 }
  0xd6   :  { %v2327_v54 = vsel %vm1223_vm3, %v1750_v14, -inf }
  0xd7   :  { %v728_v16 = vpop.f32.mrf.mxu0  ;;  %v2266_v17 = vpop.f32.mrf.mxu1 }
  0xd8   :  { %v2337_v59 = vsel %vm1223_vm3, %v728_v16, -inf }
  0xd9   :  { %v1751_v18 = vpop.f32.mrf.mxu0  ;;  %v2268_v19 = vpop.f32.mrf.mxu1 }
  0xda   :  { %v2347_v0 = vsel %vm1223_vm3, %v1751_v18, -inf }
  0xdb   :  { %v731_v20 = vpop.f32.mrf.mxu0  ;;  %v2270_v21 = vpop.f32.mrf.mxu1 }
  0xdc   :  { %v2357_v5 = vsel %vm1223_vm3, %v731_v20, -inf }
  0xdd   :  { %v1754_v22 = vpop.f32.mrf.mxu0  ;;  %v2272_v23 = vpop.f32.mrf.mxu1 }
  0xde   :  { %v2367_v18 = vsel %vm1223_vm3, %v1754_v22, -inf }
  0xdf   :  { %v744_v24 = vpop.f32.mrf.mxu0  ;;  %v2274_v25 = vpop.f32.mrf.mxu1 }
  0xe1   :  { %v1755_v26 = vpop.f32.mrf.mxu0  ;;  %v2276_v27 = vpop.f32.mrf.mxu1 }
  0xe3   :  { %v747_v28 = vpop.f32.mrf.mxu0  ;;  %v2278_v29 = vpop.f32.mrf.mxu1 }
  0xe5   :  { %v2280_v30 = vpop.f32.mrf.mxu0  ;;  %v2282_v31 = vpop.f32.mrf.mxu1 }
  0xe7   :  { %v2284_v32 = vpop.f32.mrf.mxu0  ;;  %v2286_v33 = vpop.f32.mrf.mxu1 }
  0xe9   :  { %v2288_v34 = vpop.f32.mrf.mxu0  ;;  %v2290_v35 = vpop.f32.mrf.mxu1 }
  0xea   :  { %2825 = vst [vmem:[#allocation5_spill] sm:$0xff] %v2290_v35 }
  0xeb   :  { %v2292_v36 = vpop.f32.mrf.mxu0  ;;  %v2294_v37 = vpop.f32.mrf.mxu1 }
  0xec   :  { %2826 = vst [vmem:[#allocation6_spill] sm:$0xff] %v2294_v37 }
  0xed   :  { %v1762_v38 = vpop.f32.mrf.mxu0  ;;  %v2296_v39 = vpop.f32.mrf.mxu1 }
  0xee   :  { %v2302_v41 = vsel %vm1223_vm3, %v1762_v38, -inf }
  0xef   :  { %v2306_v43 = vpop.f32.mrf.mxu0  ;;  %v2308_v44 = vpop.f32.mrf.mxu1 }
  0xf1   :  { %v1763_v45 = vpop.f32.mrf.mxu0  ;;  %v2310_v46 = vpop.f32.mrf.mxu1 }
  0xf2   :  { %v2316_v48 = vsel %vm1223_vm3, %v1763_v45, -inf }
  0xf3   :  { %v2320_v50 = vpop.f32.mrf.mxu0  ;;  %v2322_v51 = vpop.f32.mrf.mxu1 }
  0xf5   :  { %v1766_v52 = vpop.f32.mrf.mxu0  ;;  %v2324_v53 = vpop.f32.mrf.mxu1 }
  0xf6   :  { %v2330_v55 = vsel %vm1223_vm3, %v1766_v52, -inf }
  0xf7   :  { %v792_v57 = vpop.f32.mrf.mxu0  ;;  %v2334_v58 = vpop.f32.mrf.mxu1 }
  0xf8   :  { %v2340_v60 = vsel %vm1223_vm3, %v792_v57, -inf  ;;  %v2377_v57 = vsel %vm1223_vm3, %v744_v24, -inf }
  0xf9   :  { %v1767_v62 = vpop.f32.mrf.mxu0  ;;  %v2344_v63 = vpop.f32.mrf.mxu1  ;;  %2830 = vst [vmem:[#allocation10_spill] sm:$0xff] %v2377_v57 }
  0xfa   :  { %v2350_v1 = vsel %vm1223_vm3, %v1767_v62, -inf }
  0xfb   :  { %v795_v3 = vpop.f32.mrf.mxu0  ;;  %v2354_v4 = vpop.f32.mrf.mxu1 }
  0xfc   :  { %2827 = vst [vmem:[#allocation7_spill] sm:$0xff] %v2354_v4  ;;  %v2360_v6 = vsel %vm1223_vm3, %v795_v3, -inf }
  0xfd   :  { %v1770_v14 = vpop.f32.mrf.mxu0  ;;  %v2364_v16 = vpop.f32.mrf.mxu1 }
  0xfe   :  { %2828 = vst [vmem:[#allocation8_spill] sm:$0xff] %v2364_v16  ;;  %v2370_v38 = vsel %vm1223_vm3, %v1770_v14, -inf  ;;  %v2387_v14 = vsel %vm1223_vm3, %v1755_v26, -inf }
  0xff   :  { %v808_v20 = vpop.f32.mrf.mxu0  ;;  %v2374_v52 = vpop.f32.mrf.mxu1  ;;  %2833 = vst [vmem:[#allocation13_spill] sm:$0xff] %v2387_v14 }
 0x100   :  { %2829 = vst [vmem:[#allocation9_spill] sm:$0xff] %v2374_v52  ;;  %v2380_v62 = vsel %vm1223_vm3, %v808_v20, -inf  ;;  %v2397_v20 = vsel %vm1223_vm3, %v747_v28, -inf  ;;  %v2413_v28 = vsel %vm1223_vm3, %v2284_v32, -inf  ;;  %v2429_v32 = vsel %vm1223_vm3, %v2292_v36, -inf }
 0x101   :  { %2831 = vst [vmem:[#allocation11_spill] sm:$0xff] %v2380_v62  ;;  %v1771_v22 = vpop.f32.mrf.mxu0  ;;  %v2384_v10 = vpop.f32.mrf.mxu1  ;;  %2836 = vst [vmem:[#allocation16_spill] sm:$0xff] %v2397_v20 }
 0x102   :  { %2832 = vst [vmem:[#allocation12_spill] sm:$0xff] %v2384_v10  ;;  %v2390_v45 = vsel %vm1223_vm3, %v1771_v22, -inf  ;;  %v1434_v22 = vsel %vm1223_vm3, %v2280_v30, -inf  ;;  %2840 = vst [vmem:[#allocation20_spill] sm:$0xff] %v2413_v28  ;;  %v1449_v30 = vsel %vm1223_vm3, %v2288_v34, -inf }
 0x103   :  { %2834 = vst [vmem:[#allocation14_spill] sm:$0xff] %v2390_v45  ;;  %v811_v24 = vpop.f32.mrf.mxu0  ;;  %v2394_v61 = vpop.f32.mrf.mxu1  ;;  %2844 = vst [vmem:[#allocation24_spill] sm:$0xff] %v2429_v32 }
 0x104   :  { %2835 = vst [vmem:[#allocation15_spill] sm:$0xff] %v2394_v61  ;;  %v2400_v3 = vsel %vm1223_vm3, %v811_v24, -inf }
 0x105   :  { %2837 = vst [vmem:[#allocation17_spill] sm:$0xff] %v2400_v3  ;;  %v1774_v26 = vpop.f32.mrf.mxu0  ;;  %v2404_v49 = vpop.f32.mrf.mxu1 }
 0x106   :  { %2838 = vst [vmem:[#allocation18_spill] sm:$0xff] %v2404_v49  ;;  %v1435_v2 = vsel %vm1223_vm3, %v1774_v26, -inf }
 0x107   :  { %v1436_v42 = vmax.f32 %v1434_v22, %v1435_v2  ;;  %v824_v37 = vpop.f32.mrf.mxu0  ;;  %v2409_v61 = vpop.f32.mrf.mxu1 }
 0x108   :  { %2839 = vst [vmem:[#allocation19_spill] sm:$0xff] %v2409_v61  ;;  %v2416_v24 = vsel %vm1223_vm3, %v824_v37, -inf }
 0x109   :  { %2841 = vst [vmem:[#allocation21_spill] sm:$0xff] %v2416_v24  ;;  %v1775_v49 = vpop.f32.mrf.mxu0  ;;  %v2420_v10 = vpop.f32.mrf.mxu1 }
 0x10a   :  { %2842 = vst [vmem:[#allocation22_spill] sm:$0xff] %v2420_v10  ;;  %v1450_v2 = vsel %vm1223_vm3, %v1775_v49, -inf }
 0x10b   :  { %v1451_v26 = vmax.f32 %v1449_v30, %v1450_v2  ;;  %v827_v22 = vpop.f32.mrf.mxu0  ;;  %v2425_v61 = vpop.f32.mrf.mxu1 }
 0x10c   :  { %2843 = vst [vmem:[#allocation23_spill] sm:$0xff] %v2425_v61  ;;  %v2432_v37 = vsel %vm1223_vm3, %v827_v22, -inf }
 0x10d   :  { %2845 = vst [vmem:[#allocation25_spill] sm:$0xff] %v2432_v37  ;;  %v1778_v10 = vpop.f32.mrf.mxu0  ;;  %v2436_v24 = vpop.f32.mrf.mxu1 }
 0x10f   :  { %v840_v34 = vpop.f32.mrf.mxu0  ;;  %v2438_v28 = vpop.f32.mrf.mxu1 }
 0x111   :  { %v1779_v49 = vpop.f32.mrf.mxu0  ;;  %v2440_v30 = vpop.f32.mrf.mxu1 }
 0x112   :  { %2846 = vst [vmem:[#allocation26_spill] sm:$0xff] %v2440_v30 }
 0x113   :  { %v843_v2 = vpop.f32.mrf.mxu0  ;;  %v2442_v61 = vpop.f32.mrf.mxu1 }
 0x115   :  { %v2444_v36 = vpop.f32.mrf.mxu0  ;;  %v2446_v35 = vpop.f32.mrf.mxu1 }
 0x116   :  { %2847 = vst [vmem:[#allocation27_spill] sm:$0xff] %v2446_v35 }
 0x117   :  { %v2448_v22 = vpop.f32.mrf.mxu0  ;;  %v2450_v3 = vpop.f32.mrf.mxu1 }
 0x118   :  { %2848 = vst [vmem:[#allocation28_spill] sm:$0xff] %v2450_v3 }
 0x119   :  { %v2452_v56 = vpop.f32.mrf.mxu0  ;;  %v2454_v37 = vpop.f32.mrf.mxu1 }
 0x11a   :  { %2849 = vst [vmem:[#allocation29_spill] sm:$0xff] %v2454_v37 }
 0x11b   :  { %v2456_v32 = vpop.f32.mrf.mxu0  ;;  %v2458_v20 = vpop.f32.mrf.mxu1 }
 0x11c   :  { %2850 = vst [vmem:[#allocation30_spill] sm:$0xff] %v2458_v20 }
 0x11d   :  { %v2460_v52 = vpop.f32.mrf.mxu0  ;;  %v2462_v45 = vpop.f32.mrf.mxu1 }
 0x11e   :  { %2851 = vst [vmem:[#allocation31_spill] sm:$0xff] %v2462_v45  ;;  %v1261_v45 = vsel %vm1223_vm3, %v2252_v7, -inf  ;;  %v2497_v7 = vsel %vm1223_vm3, %v2262_v13, -inf  ;;  %v1225_v13 = vsel %vm1223_vm3, %v2306_v43, -inf }
 0x11f   :  { %v2464_v14 = vpop.f32.mrf.mxu0  ;;  %v2466_v30 = vpop.f32.mrf.mxu1 }
 0x120   :  { %2852 = vst [vmem:[#allocation32_spill] sm:$0xff] %v2464_v14  ;;  %2853 = vst [vmem:[#allocation33_spill] sm:$0xff] %v2466_v30 }
 0x121   :  { %v2468_v35 = vpop.f32.mrf.mxu0  ;;  %v2470_v62 = vpop.f32.mrf.mxu1 }
 0x122   :  { %2854 = vst [vmem:[#allocation34_spill] sm:$0xff] %v2470_v62  ;;  %v1224_v62 = vsel %vm1223_vm3, %v2254_v8, -inf  ;;  %v2505_v8 = vsel %vm1223_vm3, %v2266_v17, -inf  ;;  %v2523_v17 = vsel %vm1223_vm3, %v2272_v23, -inf  ;;  %v2545_v23 = vsel %vm1223_vm3, %v2282_v31, -inf }
 0x123   :  { %v2472_v3 = vpop.f32.mrf.mxu0  ;;  %v2474_v57 = vpop.f32.mrf.mxu1 }
 0x124   :  { %2855 = vst [vmem:[#allocation35_spill] sm:$0xff] %v2474_v57  ;;  %v1231_v57 = vsel %vm1223_vm3, %v2256_v9, -inf  ;;  %v2509_v9 = vsel %vm1223_vm3, %v2268_v19, -inf  ;;  %v2527_v19 = vsel %vm1223_vm3, %v2274_v25, -inf  ;;  %v2549_v25 = vsel %vm1223_vm3, %v2286_v33, -inf }
 0x125   :  { %v1790_v37 = vpop.f32.mrf.mxu0  ;;  %v2476_v16 = vpop.f32.mrf.mxu1  ;;  %v1233_v33 = vsel %vm1223_vm3, %v2308_v44, -inf  ;;  %v2578_v44 = vsel %vm1223_vm3, %v2324_v53, -inf  ;;  %v2592_v53 = vsel %vm1223_vm3, %v2344_v63, -inf  ;;  %v1235_v63 = vsel %vm1223_vm3, %v2438_v28, -inf }
 0x126   :  { %2856 = vst [vmem:[#allocation36_spill] sm:$0xff] %v2476_v16  ;;  %v1437_v20 = vsel %vm1223_vm3, %v1790_v37, -inf  ;;  %v1239_v16 = vsel %vm1223_vm3, %v2260_v12, -inf  ;;  %v1276_v37 = vsel %vm1223_vm3, %v2258_v11, -inf  ;;  %v2515_v11 = vsel %vm1223_vm3, %v2270_v21, -inf }
 0x127   :  { %v2481_v4 = vmax.f32 %v1436_v42, %v1437_v20  ;;  %v2483_v14 = vpop.f32.mrf.mxu0  ;;  %v2485_v30 = vpop.f32.mrf.mxu1  ;;  %v2501_v42 = vsel %vm1223_vm3, %v2264_v15, -inf  ;;  %v1257_v15 = vsel %vm1223_vm3, %v1778_v10, -inf  ;;  %v2541_v10 = vsel %vm1223_vm3, %v2278_v29, -inf }
 0x128   :  { %2858 = vst [vmem:[#allocation38_spill] sm:$0xff] %v2485_v30  ;;  %v2862_v29 = vmax.f32 %v2299_v40, %v2302_v41  ;;  %v1242_v41 = vsel %vm1223_vm3, %v843_v2, -inf  ;;  %v1317_v2 = vsel %vm1223_vm3, %v2444_v36, -inf  ;;  %v2865_v28 = vmax.f32 %v2337_v59, %v2340_v60 }
 0x129   :  { %2857 = vst [vmem:[#allocation37_spill] sm:$0xff] %v2481_v4  ;;  %v1791_v12 = vpop.f32.mrf.mxu0  ;;  %v2511_v20 = vpop.f32.mrf.mxu1 }
 0x12a   :  { %2859 = vst [vmem:[#allocation39_spill] sm:$0xff] %v2511_v20  ;;  %v1452_v30 = vsel %vm1223_vm3, %v1791_v12, -inf  ;;  %v2531_v20 = vsel %vm1223_vm3, %v2276_v27, -inf  ;;  %v1227_v27 = vsel %vm1223_vm3, %v840_v34, -inf  ;;  %v1240_v12 = vsel %vm1223_vm3, %v2320_v50, -inf }
 0x12b   :  { %v2533_v21 = vmax.f32 %v1451_v26, %v1452_v30  ;;  %v2535_v4 = vpop.f32.mrf.mxu0  ;;  %v2537_v43 = vpop.f32.mrf.mxu1  ;;  %v1226_v26 = vmax.f32 %v1224_v62, %v1225_v13  ;;  %v2554_v30 = vsel %vm1223_vm3, %v2296_v39, -inf  ;;  %v2567_v62 = vsel %vm1223_vm3, %v2310_v46, -inf }
 0x12c   :  { %2861 = vst [vmem:[#allocation41_spill] sm:$0xff] %v2537_v43  ;;  %v1258_v43 = vmax.f32 %v2862_v29, %v1257_v15  ;;  %v1272_v39 = vsel %vm1223_vm3, %v1779_v49, -inf  ;;  %v2573_v50 = vsel %vm1223_vm3, %v2322_v51, -inf  ;;  %v1241_v29 = vmax.f32 %v1239_v16, %v1240_v12 }
 0x12d   :  { %2860 = vst [vmem:[#allocation40_spill] sm:$0xff] %v2533_v21  ;;  %v1794_v31 = vpop.f32.mrf.mxu0  ;;  %v2561_v21 = vpop.f32.mrf.mxu1  ;;  %v1228_v40 = vmax.f32 %v1226_v26, %v1227_v27  ;;  %v2582_v46 = vsel %vm1223_vm3, %v2334_v58, -inf  ;;  %v2863_v51 = vmax.f32 %v2313_v47, %v2316_v48  ;;  %v1287_v58 = vsel %vm1223_vm3, %v2448_v22, -inf }
 0x12e   :  { %v1259_v34 = vsel %vm1223_vm3, %v1794_v31, -inf  ;;  %v1243_v12 = vmax.f32 %v1241_v29, %v1242_v41  ;;  %v1332_v47 = vsel %vm1223_vm3, %v2452_v56, -inf  ;;  %v2864_v41 = vmax.f32 %v2327_v54, %v2330_v55 }
 0x12f   :  { %v1260_v13 = vmax.f32 %v1258_v43, %v1259_v34  ;;  %v904_v15 = vpop.f32.mrf.mxu0  ;;  %v1273_v31 = vmax.f32 %v2863_v51, %v1272_v39  ;;  %v1160_v26 = vpop.f32.mrf.mxu1  ;;  %v1302_v56 = vsel %vm1223_vm3, %v2456_v32, -inf  ;;  %v1288_v54 = vmax.f32 %v2865_v28, %v1287_v58  ;;  %v2873_v28 = vld [vmem:[#allocation11_spill] sm:$0xff] }
 0x130   :  { %v1229_v49 = vsel %vm1223_vm3, %v904_v15, -inf  ;;  %v1318_v22 = vmax.f32 %v2864_v41, %v1317_v2  ;;  %v2866_v55 = vmax.f32 %v2347_v0, %v2350_v1  ;;  %v1237_v59 = vsel %vm1223_vm3, %v1160_v26, -inf }
 0x131   :  { %v1262_v43 = vmax.f32 %v1260_v13, %v1261_v45  ;;  %v1230_v27 = vmax.f32 %v1228_v40, %v1229_v49  ;;  %v1795_v16 = vpop.f32.mrf.mxu0  ;;  %v1265_v40 = vsel %vm1223_vm3, %v2436_v24, -inf  ;;  %v2612_v29 = vpop.f32.mrf.mxu1  ;;  %v1250_v24 = vsel %vm1223_vm3, %v2442_v61, -inf }
 0x132   :  { %v1274_v34 = vsel %vm1223_vm3, %v1795_v16, -inf  ;;  %v1333_v51 = vmax.f32 %v2866_v55, %v1332_v47  ;;  %v2867_v61 = vmax.f32 %v2357_v5, %v2360_v6  ;;  %v2868_v5 = vmax.f32 %v2367_v18, %v2370_v38 }
 0x133   :  { %v1232_v48 = vmax.f32 %v1230_v27, %v1231_v57  ;;  %v1275_v39 = vmax.f32 %v1273_v31, %v1274_v34  ;;  %v907_v36 = vpop.f32.mrf.mxu0  ;;  %v1264_v45 = vmax.f32 %v1262_v43, %v2554_v30  ;;  %v2869_v34 = vld [vmem:[#allocation32_spill] sm:$0xff]  ;;  %v1392_v47 = vsel %vm1223_vm3, %v2468_v35, -inf }
 0x134   :  { %v1244_v13 = vsel %vm1223_vm3, %v907_v36, -inf  ;;  %v1303_v27 = vmax.f32 %v2867_v61, %v1302_v56  ;;  %v1347_v26 = vsel %vm1223_vm3, %v2869_v34, -inf  ;;  %v1267_v38 = vsel %vm1223_vm3, %v2561_v21, -inf  ;;  %v2872_v21 = vld [vmem:[#allocation10_spill] sm:$0xff]  ;;  %v2881_v34 = vld [vmem:[#allocation16_spill] sm:$0xff] }
 0x135   :  { %v2610_v57 = vmax.f32 %v1275_v39, %v1276_v37  ;;  %v1245_v15 = vmax.f32 %v1243_v12, %v1244_v13  ;;  %v1798_v30 = vpop.f32.mrf.mxu0  ;;  %v1234_v49 = vmax.f32 %v1232_v48, %v1233_v33  ;;  %v1377_v37 = vsel %vm1223_vm3, %v2460_v52, -inf  ;;  %v1163_v52 = vpop.f32.mrf.mxu1 }
 0x136   :  { %v1319_v32 = vsel %vm1223_vm3, %v1798_v30, -inf  ;;  %v1378_v6 = vmax.f32 %v2868_v5, %v1377_v37  ;;  %v1266_v41 = vmax.f32 %v1264_v45, %v1265_v40  ;;  %v2880_v5 = vld [vmem:[#allocation28_spill] sm:$0xff] }
 0x137   :  { %v1247_v31 = vmax.f32 %v1245_v15, %v2497_v7  ;;  %v1320_v2 = vmax.f32 %v1318_v22, %v1319_v32  ;;  %v920_v33 = vpop.f32.mrf.mxu0  ;;  %v1236_v43 = vmax.f32 %v1234_v49, %v1235_v63  ;;  %v1279_v0 = vmax.f32 %v2610_v57, %v2567_v62  ;;  %v2646_v36 = vpop.f32.mrf.mxu1  ;;  %v2870_v15 = vld [vmem:[#allocation7_spill] sm:$0xff]  ;;  %v2871_v49 = vld [vmem:[#allocation8_spill] sm:$0xff] }
 0x138   :  { %v1289_v60 = vsel %vm1223_vm3, %v920_v33, -inf  ;;  %v1252_v63 = vsel %vm1223_vm3, %v1163_v52, -inf  ;;  %v1308_v30 = vsel %vm1223_vm3, %v2870_v15, -inf  ;;  %v2876_v33 = vld [vmem:[#allocation13_spill] sm:$0xff] }
 0x139   :  { %v2634_v1 = vmax.f32 %v1320_v2, %v2501_v42  ;;  %v1290_v16 = vmax.f32 %v1288_v54, %v1289_v60  ;;  %v1799_v7 = vpop.f32.mrf.mxu0  ;;  %v1238_v12 = vmax.f32 %v1236_v43, %v1237_v59  ;;  %v1249_v58 = vmax.f32 %v1247_v31, %v2573_v50  ;;  %v2875_v31 = vld [vmem:[#allocation26_spill] sm:$0xff] }
 0x13a   :  { %v1334_v62 = vsel %vm1223_vm3, %v1799_v7, -inf  ;;  %v2874_v54 = vmax.f32 %v2872_v21, %v2873_v28  ;;  %v1280_v2 = vsel %vm1223_vm3, %v2875_v31, -inf  ;;  %v2877_v43 = vld [vmem:[#allocation14_spill] sm:$0xff]  ;;  %v1268_v60 = vmax.f32 %v1266_v41, %v1267_v38  ;;  %v2885_v21 = vld [vmem:[#allocation12_spill] sm:$0xff]  ;;  %v2886_v28 = vld [vmem:[#allocation15_spill] sm:$0xff] }
 0x13b   :  { %v1292_v42 = vmax.f32 %v1290_v16, %v2505_v8  ;;  %v1335_v48 = vmax.f32 %v1333_v51, %v1334_v62  ;;  %1464 = vxpose.xlu0.b32.start [1/16] (narrow) %v1238_v12, 8  ;;  %v923_v39 = vpop.f32.mrf.mxu0  ;;  %v1251_v50 = vmax.f32 %v1249_v58, %v1250_v24  ;;  %v1324_v18 = vmax.f32 %v2634_v1, %v2578_v44  ;;  %v2879_v12 = vld [vmem:[#allocation9_spill] sm:$0xff]  ;;  %v2902_v44 = vld [vmem:[#allocation23_spill] sm:$0xff] }
 0x13c   :  { %v1304_v35 = vsel %vm1223_vm3, %v923_v39, -inf  ;;  %v2662_v24 = vsel %vm1223_vm3, %v2871_v49, -inf  ;;  %v1348_v55 = vmax.f32 %v2874_v54, %v1347_v26  ;;  %v2878_v61 = vmax.f32 %v2876_v33, %v2877_v43  ;;  %v2882_v26 = vld [vmem:[#allocation17_spill] sm:$0xff]  ;;  %v2891_v33 = vld [vmem:[#allocation30_spill] sm:$0xff] }
 0x13d   :  { %v2655_v22 = vmax.f32 %v1335_v48, %v2509_v9  ;;  %v1305_v8 = vmax.f32 %v1303_v27, %v1304_v35  ;;  %v1802_v13 = vpop.f32.mrf.mxu0  ;;  %v1253_v56 = vmax.f32 %v1251_v50, %v1252_v63  ;;  %v1294_v57 = vmax.f32 %v1292_v42, %v2582_v46  ;;  %v1176_v46 = vpop.f32.mrf.mxu1 }
 0x13e   :  { %v1379_v45 = vsel %vm1223_vm3, %v1802_v13, -inf  ;;  %v1362_v9 = vsel %vm1223_vm3, %v2472_v3, -inf  ;;  %v1393_v27 = vmax.f32 %v2878_v61, %v1392_v47  ;;  %v1281_v16 = vmax.f32 %v1279_v0, %v1280_v2 }
 0x13f   :  { %v1307_v40 = vmax.f32 %v1305_v8, %v2515_v11  ;;  %v1380_v51 = vmax.f32 %v1378_v6, %v1379_v45  ;;  %1465 = vxpose.xlu0.b32.cont [2/16] (narrow) %v1253_v56, 8  ;;  %v936_v32 = vpop.f32.mrf.mxu0  ;;  %v1339_v37 = vmax.f32 %v2655_v22, %v2592_v53  ;;  %v2684_v58 = vsel %vm1223_vm3, %v2879_v12, -inf  ;;  %v2697_v39 = vpop.f32.mrf.mxu1  ;;  %v2892_v12 = vld [vmem:[#allocation18_spill] sm:$0xff] }
 0x140   :  { %v1349_v59 = vsel %vm1223_vm3, %v936_v32, -inf  ;;  %v1295_v6 = vsel %vm1223_vm3, %v2880_v5, -inf  ;;  %v2883_v47 = vmax.f32 %v2881_v34, %v2882_v26  ;;  %v1282_v63 = vsel %vm1223_vm3, %v2612_v29, -inf  ;;  %v2893_v5 = vld [vmem:[#allocation27_spill] sm:$0xff]  ;;  %v2894_v26 = vld [vmem:[#allocation24_spill] sm:$0xff] }
 0x141   :  { %v2680_v3 = vmax.f32 %v1380_v51, %v2523_v17  ;;  %v1350_v11 = vmax.f32 %v1348_v55, %v1349_v59  ;;  %v1803_v52 = vpop.f32.mrf.mxu0  ;;  %v1309_v7 = vmax.f32 %v1307_v40, %v1308_v30  ;;  %v1407_v17 = vsel %vm1223_vm3, %v2483_v14, -inf  ;;  %v2884_v30 = vld [vmem:[#allocation5_spill] sm:$0xff]  ;;  %v1179_v40 = vpop.f32.mrf.mxu1 }
 0x142   :  { %v1363_v62 = vmax.f32 %v2883_v47, %v1362_v9  ;;  %v1394_v42 = vsel %vm1223_vm3, %v1803_v52, -inf  ;;  %v1297_v35 = vsel %vm1223_vm3, %v1176_v46, -inf  ;;  %v1296_v8 = vmax.f32 %v1294_v57, %v1295_v6  ;;  %v2887_v57 = vld [vmem:[#allocation20_spill] sm:$0xff]  ;;  %v2888_v55 = vld [vmem:[#allocation21_spill] sm:$0xff] }
 0x143   :  { %v2695_v48 = vmax.f32 %v1350_v11, %v2527_v19  ;;  %v1395_v0 = vmax.f32 %v1393_v27, %v1394_v42  ;;  %1466 = vxpose.xlu0.b32.cont [3/16] (narrow) %v1268_v60, 8  ;;  %v939_v50 = vpop.f32.mrf.mxu0  ;;  %v1384_v38 = vmax.f32 %v2680_v3, %v2662_v24  ;;  %v1283_v56 = vmax.f32 %v1281_v16, %v1282_v63  ;;  %v2890_v46 = vld [vmem:[#allocation37_spill] sm:$0xff]  ;;  %v2898_v63 = vld [vmem:[#allocation19_spill] sm:$0xff] }
 0x144   :  { %v1364_v41 = vsel %vm1223_vm3, %v939_v50, -inf  ;;  %v1456_v49 = vsel %vm1223_vm3, %v2884_v30, -inf  ;;  %v2714_v29 = vsel %vm1223_vm3, %v2885_v21, -inf  ;;  %v2718_v54 = vsel %vm1223_vm3, %v2886_v28, -inf  ;;  %v2895_v47 = vld [vmem:[#allocation25_spill] sm:$0xff]  ;;  %v2900_v28 = vld [vmem:[#allocation6_spill] sm:$0xff] }
 0x145   :  { %v2706_v14 = vmax.f32 %v1395_v0, %v2531_v20  ;;  %v1365_v19 = vmax.f32 %v1363_v62, %v1364_v41  ;;  %v1806_v13 = vpop.f32.mrf.mxu0  ;;  %v1354_v15 = vmax.f32 %v2695_v48, %v2684_v58  ;;  %v2889_v45 = vmax.f32 %v2887_v57, %v2888_v55  ;;  %v2899_v41 = vld [vmem:[#allocation36_spill] sm:$0xff] }
 0x146   :  { %v1439_v20 = vsel %vm1223_vm3, %v1806_v13, -inf  ;;  %v1310_v43 = vsel %vm1223_vm3, %v2891_v33, -inf  ;;  %v1422_v61 = vsel %vm1223_vm3, %v2535_v4, -inf  ;;  %v1298_v59 = vmax.f32 %v1296_v8, %v1297_v35 }
 0x147   :  { %v1408_v9 = vmax.f32 %v2889_v45, %v1407_v17  ;;  %v1367_v51 = vmax.f32 %v1365_v19, %v2541_v10  ;;  %v1440_v32 = vmax.f32 %v2890_v46, %v1439_v20  ;;  %1467 = vxpose.xlu0.b32.cont [4/16] (narrow) %v1283_v56, 8  ;;  %v952_v31 = vpop.f32.mrf.mxu0  ;;  %v1399_v2 = vmax.f32 %v2706_v14, %v2714_v29  ;;  %v2901_v20 = vld [vmem:[#allocation22_spill] sm:$0xff]  ;;  %v2904_v46 = vld [vmem:[#allocation39_spill] sm:$0xff] }
 0x148   :  { %v1409_v27 = vsel %vm1223_vm3, %v952_v31, -inf  ;;  %v1311_v52 = vmax.f32 %v1309_v7, %v1310_v43  ;;  %v1443_v58 = vsel %vm1223_vm3, %v2892_v12, -inf  ;;  %v1325_v6 = vsel %vm1223_vm3, %v2893_v5, -inf  ;;  %v2897_v7 = vld [vmem:[#allocation40_spill] sm:$0xff] }
 0x149   :  { %v1442_v60 = vmax.f32 %v1440_v32, %v2545_v23  ;;  %v1410_v11 = vmax.f32 %v1408_v9, %v1409_v27  ;;  %v1807_v10 = vpop.f32.mrf.mxu0  ;;  %v1369_v16 = vmax.f32 %v1367_v51, %v2718_v54  ;;  %v1312_v34 = vsel %vm1223_vm3, %v1179_v40, -inf  ;;  %v1866_v23 = vpop.f32.mrf.mxu1 }
 0x14a   :  { %v1454_v4 = vsel %vm1223_vm3, %v1807_v10, -inf  ;;  %v2896_v62 = vmax.f32 %v2894_v26, %v2895_v47  ;;  %v1413_v35 = vsel %vm1223_vm3, %v2898_v63, -inf  ;;  %v1445_v8 = vsel %vm1223_vm3, %v2899_v41, -inf  ;;  %v2910_v63 = vld [vmem:[#allocation41_spill] sm:$0xff] }
 0x14b   :  { %v1412_v17 = vmax.f32 %v1410_v11, %v2549_v25  ;;  %v1455_v48 = vmax.f32 %v2897_v7, %v1454_v4  ;;  %1468 = vxpose.xlu0.b32.cont [5/16] (narrow) %v1298_v59, 8  ;;  %v955_v0 = vpop.f32.mrf.mxu0  ;;  %v1444_v50 = vmax.f32 %v1442_v60, %v1443_v58  ;;  %v1326_v13 = vmax.f32 %v1324_v18, %v1325_v6  ;;  %v1192_v9 = vpop.f32.mrf.mxu1  ;;  %v2903_v18 = vld [vmem:[#allocation29_spill] sm:$0xff]  ;;  %v2906_v58 = vld [vmem:[#allocation35_spill] sm:$0xff] }
 0x14c   :  { %v1423_v42 = vmax.f32 %v2896_v62, %v1422_v61  ;;  %v1424_v19 = vsel %vm1223_vm3, %v955_v0, -inf  ;;  %v1313_v25 = vmax.f32 %v1311_v52, %v1312_v34  ;;  %v1426_v54 = vsel %vm1223_vm3, %v2900_v28, -inf  ;;  %v2905_v59 = vld [vmem:[#allocation33_spill] sm:$0xff]  ;;  %v2908_v62 = vld [vmem:[#allocation34_spill] sm:$0xff] }
 0x14d   :  { %v1457_v56 = vmax.f32 %v1455_v48, %v1456_v49  ;;  %v1414_v21 = vmax.f32 %v1412_v17, %v1413_v35  ;;  %v1458_v57 = vsel %vm1223_vm3, %v2901_v20, -inf  ;;  %v1327_v55 = vsel %vm1223_vm3, %v2646_v36, -inf  ;;  %v1867_v27 = vpop.f32.mrf.mxu1  ;;  %v2909_v0 = vld [vmem:[#allocation38_spill] sm:$0xff] }
 0x14e   :  { %v1425_v30 = vmax.f32 %v1423_v42, %v1424_v19  ;;  %v1446_v45 = vmax.f32 %v1444_v50, %v1445_v8  ;;  %v1428_v1 = vsel %vm1223_vm3, %v2902_v44, -inf  ;;  %v1340_v49 = vsel %vm1223_vm3, %v2903_v18, -inf }
 0x14f   :  { %1469 = vxpose.xlu0.b32.cont [6/16] (narrow) %v1313_v25, 8  ;;  %v1459_v51 = vmax.f32 %v1457_v56, %v1458_v57  ;;  %v1460_v32 = vsel %vm1223_vm3, %v2904_v46, -inf  ;;  %v1328_v31 = vmax.f32 %v1326_v13, %v1327_v55  ;;  %v1341_v33 = vmax.f32 %v1339_v37, %v1340_v49  ;;  %v1195_v12 = vpop.f32.mrf.mxu1 }
 0x150   :  { %v1427_v40 = vmax.f32 %v1425_v30, %v1426_v54  ;;  %v1342_v61 = vsel %vm1223_vm3, %v2697_v39, -inf  ;;  %v1355_v60 = vsel %vm1223_vm3, %v2905_v59, -inf  ;;  %v1357_v52 = vsel %vm1223_vm3, %v1192_v9, -inf  ;;  %v2907_v39 = vld [vmem:[#allocation31_spill] sm:$0xff] }
 0x151   :  { %v1461_v43 = vmax.f32 %v1459_v51, %v1460_v32  ;;  %v1343_v11 = vmax.f32 %v1341_v33, %v1342_v61  ;;  %v1356_v10 = vmax.f32 %v1354_v15, %v1355_v60  ;;  %v1370_v53 = vsel %vm1223_vm3, %v2906_v58, -inf  ;;  %v1870_v6 = vpop.f32.mrf.mxu1 }
 0x152   :  { %v1429_v36 = vmax.f32 %v1427_v40, %v1428_v1  ;;  %v1371_v37 = vmax.f32 %v1369_v16, %v1370_v53  ;;  %v1372_v5 = vsel %vm1223_vm3, %v1195_v12, -inf  ;;  %v1385_v34 = vsel %vm1223_vm3, %v2907_v39, -inf }
 0x153   :  { %1470 = vxpose.xlu0.b32.cont [7/16] (narrow) %v1328_v31, 8  ;;  %v1358_v22 = vmax.f32 %v1356_v10, %v1357_v52  ;;  %v1386_v15 = vmax.f32 %v1384_v38, %v1385_v34  ;;  %v1387_v26 = vsel %vm1223_vm3, %v1866_v23, -inf  ;;  %v1208_v47 = vpop.f32.mrf.mxu1  ;;  %v1400_v42 = vsel %vm1223_vm3, %v2908_v62, -inf }
 0x154   :  { %v1373_v4 = vmax.f32 %v1371_v37, %v1372_v5  ;;  %v1401_v17 = vmax.f32 %v1399_v2, %v1400_v42  ;;  %v1402_v7 = vsel %vm1223_vm3, %v1867_v27, -inf  ;;  %v1415_v24 = vsel %vm1223_vm3, %v2909_v0, -inf }
 0x155   :  { %v1388_v16 = vmax.f32 %v1386_v15, %v1387_v26  ;;  %v1871_v48 = vpop.f32.mrf.mxu1  ;;  %v1416_v38 = vmax.f32 %v1414_v21, %v1415_v24  ;;  %v1417_v23 = vsel %vm1223_vm3, %v1208_v47, -inf  ;;  %v1430_v35 = vsel %vm1223_vm3, %v2910_v63, -inf }
 0x156   :  { %v1403_v3 = vmax.f32 %v1401_v17, %v1402_v7  ;;  %v1431_v8 = vmax.f32 %v1429_v36, %v1430_v35  ;;  %v1447_v2 = vsel %vm1223_vm3, %v1870_v6, -inf  ;;  %v1462_v13 = vsel %vm1223_vm3, %v1871_v48, -inf }
 0x157   :  { %1471 = vxpose.xlu0.b32.cont [8/16] (narrow) %v1343_v11, 8  ;;  %v1211_v50 = vpop.f32.mrf.mxu1  ;;  %v1418_v41 = vmax.f32 %v1416_v38, %v1417_v23  ;;  %v1448_v19 = vmax.f32 %v1446_v45, %v1447_v2  ;;  %v1463_v56 = vmax.f32 %v1461_v43, %v1462_v13  ;;  %v1968_v54 = vmov 0.0  }
 0x158   :  { %v1432_v14 = vsel %vm1223_vm3, %v1211_v50, -inf  ;;  %1519 = vst.msk [vmem:[%s2814_s3] sm:$0xf] %vm1518_vm5, %v1968_v54 }
 0x159   :  { %v1433_v29 = vmax.f32 %v1431_v8, %v1432_v14 }
 0x15b   :  { %1472 = vxpose.xlu0.b32.cont [9/16] (narrow) %v1358_v22, 8 }
 0x15f   :  { %1473 = vxpose.xlu0.b32.cont [10/16] (narrow) %v1373_v4, 8 }
 0x163   :  { %1474 = vxpose.xlu0.b32.cont [11/16] (narrow) %v1388_v16, 8 }
 0x167   :  { %1475 = vxpose.xlu0.b32.cont [12/16] (narrow) %v1403_v3, 8 }
 0x16b   :  { %1476 = vxpose.xlu0.b32.cont [13/16] (narrow) %v1418_v41, 8 }
 0x16f   :  { %1477 = vxpose.xlu0.b32.cont [14/16] (narrow) %v1433_v29, 8 }
 0x173   :  { %1478 = vxpose.xlu0.b32.cont [15/16] (narrow) %v1448_v19, 8 }
 0x177   :  { %1479 = vxpose.xlu0.b32.end [16/16] (narrow) %v1463_v56, 8 }
 0x1b7   :  { %v1480_v30 = vpop.trf.xlu0 }
 0x1b8   :  { %v1510_v25 = vmul.f32 %v1480_v30, %v1480_v30  ;;  %1496 = vst [vmem:[#allocation2] sm:$0xf] %v1480_v30  ;;  %v1507_v21 = vsel %vm1506_vm4, %v1480_v30, 0.0 }
 0x1b9   :  { %1508 = vadd.xlane.f32.xlu1 %v1507_v21 }
 0x1ba   :  { %v1511_v28 = vsel %vm1506_vm4, %v1510_v25, 0.0 }
 0x1bd   :  { %1512 = vadd.xlane.f32.xlu1 %v1511_v28 }
 0x1be   :  { %1956 = shalt.err (!%p1953_p4)
}
 0x1bf   :  { %1535 = dma.vmem_to_hbm [thread:$0]  %s1533_s6, 64, %s2813_s2, [#allocation3]   ;;  %vm1521_vm6 = vcmask 7168   ;;  %v1520_v57 = vld [vmem:[%s2814_s3] sm:$0xf] }
 0x242   :  { %v1509_v20 = vpop.xlane.xlu1 %1508 }
 0x246   :  { %v1513_v55 = vpop.xlane.xlu1 %1512 }
 0x247   :  { %v1522_v45 = vsel %vm1521_vm6, %v1509_v20, %v1513_v55 }
 0x248   :  { %v1523_v9 = vadd.f32 %v1522_v45, %v1520_v57 }
 0x24a   :  { %1525 = vst.msk [vmem:[%s2814_s3] sm:$0xf] %vm1518_vm5, %v1523_v9 }
 0x24b   :  { %1965 = dma.done.wait [#allocation3], 64  }
 0x24c   :  { %1966 = vsyncadd [#allocation3], 4294967232 }
 0x24d   :  { %1543 = vsyncpa [#allocation3], 1 }

</bundles_post_ra>
